<compile_context>
chip_gen: v7x
topology: tpu7x:2x2x1
jax: 0.10.0
libtpu: 0.0.40
codegen_flags: <defaults>
</compile_context>

<pallas_src>
import functools
import math

import jax
import jax.numpy as jnp
from jax import lax
from jax.experimental import pallas as pl
from jax.experimental.pallas import tpu as pltpu


# ----------------------------------------------------------------------------
# helpers
# ----------------------------------------------------------------------------
def _vmem_limit_bytes():
    """Generation-aware VMEM request: never ask for the whole physical VMEM."""
    cap = 128 * 1024 * 1024
    try:
        info = pltpu.get_tpu_info()
        cap = int(getattr(info, "vmem_capacity_bytes", cap) or cap)
    except Exception:
        pass
    # ~48 MiB on v7x (64 MiB physical), ~96 MiB on v5e/v6e (128 MiB physical).
    return min((cap * 3) // 4, 96 * 1024 * 1024)


def _largest_divisor(n, limit, multiple_of=1):
    """Largest d dividing n with d <= limit and d % multiple_of == 0.

    Falls back to n itself (block == full dim is always a legal block shape).
    TODO(synk): pad-and-mask path for awkward (e.g. prime) extents so the
    fallback cannot blow past the VMEM budget for very long inputs.
    """
    limit = min(n, max(1, limit))
    for d in range(limit, 0, -1):
        if n % d == 0 and d % multiple_of == 0:
            return d
    return n


def _pick_time_chunk(T, B, tc_cap):
    """Largest tc dividing T with tc <= tc_cap and (tc*B) % 8 == 0 (so the
    (tc*B, F) x-block satisfies the sublane constraint), falling back to the
    full sequence (block == full array dim is always legal)."""
    for tc in range(min(T, max(1, tc_cap)), 0, -1):
        if T % tc == 0 and ((tc * B) % 8 == 0 or tc == T):
            return tc
    return T


# ----------------------------------------------------------------------------
# Kernel 1: BatchNorm1d batch statistics -> per-feature scale / shift
#   scale = gamma * rsqrt(var + eps);  shift = beta - mean * scale
# ----------------------------------------------------------------------------
def _bn_stats_kernel(x_ref, gamma_ref, beta_ref, scale_ref, shift_ref,
                     sum_ref, sq_ref, *, count, eps):
    c = pl.program_id(0)

    @pl.when(c == 0)
    def _init():
        sum_ref[...] = jnp.zeros_like(sum_ref)
        sq_ref[...] = jnp.zeros_like(sq_ref)

    x = x_ref[...]                                     # (rt, F) fp32
    sum_ref[...] += jnp.sum(x, axis=0, keepdims=True)
    sq_ref[...] += jnp.sum(x * x, axis=0, keepdims=True)

    @pl.when(c == pl.num_programs(0) - 1)
    def _finalize():
        inv_n = 1.0 / count
        mean = sum_ref[...] * inv_n
        # clamp: single-pass E[x^2]-E[x]^2 can cancel slightly negative in fp32
        var = jnp.maximum(sq_ref[...] * inv_n - mean * mean, 0.0)
        inv = lax.rsqrt(var + eps)
        scale = gamma_ref[...] * inv
        scale_ref[...] = scale
        shift_ref[...] = beta_ref[...] - mean * scale


def bn_scale_shift(x2, gamma, beta, *, eps=1e-5):
    """x2: (R, F) rows of the raw input; returns (scale, shift), each (1, F)."""
    R, F = x2.shape
    vmem_limit = _vmem_limit_bytes()
    rt = _largest_divisor(R, max(8, (vmem_limit // 8) // (4 * F)), 8)
    kernel = functools.partial(_bn_stats_kernel, count=float(R), eps=eps)
    return pl.pallas_call(
        kernel,
        grid=(R // rt,),
        in_specs=[pl.BlockSpec((rt, F), lambda c: (c, 0)),
                  pl.BlockSpec((1, F), lambda c: (0, 0)),
                  pl.BlockSpec((1, F), lambda c: (0, 0))],
        out_specs=(pl.BlockSpec((1, F), lambda c: (0, 0)),
                   pl.BlockSpec((1, F), lambda c: (0, 0))),
        out_shape=(jax.ShapeDtypeStruct((1, F), jnp.float32),
                   jax.ShapeDtypeStruct((1, F), jnp.float32)),
        scratch_shapes=[pltpu.VMEM((1, F), jnp.float32),
                        pltpu.VMEM((1, F), jnp.float32)],
        compiler_params=pltpu.CompilerParams(
            dimension_semantics=("arbitrary",),
            vmem_limit_bytes=vmem_limit),
    )(x2, gamma.reshape(1, F), beta.reshape(1, F))


# ----------------------------------------------------------------------------
# Kernel 2: fused input-projection + bidirectional GRU recurrence
#   grid = (direction=2 [parallel], T-chunks [arbitrary])
#   Per grid step: gi = x_chunk @ W_i_eff[d] + b   (bf16 MXU GEMM -> f32 VMEM)
#   then per time step: gh = h @ [Whr|Whz|Whn]     (bf16 MXU), fp32 gate math.
# ----------------------------------------------------------------------------
def _bigru_fused_kernel(x_ref, wi_ref, bi_ref, whh_ref, bhn_ref, out_ref,
                        h_ref, gi_ref, *, hidden, batch, unroll):
    # x_ref  : (tc*B, F)   bf16  time-major rows of this chunk (chunk index is
    #                            already direction-reversed by the index_map)
    # wi_ref : (F, 3H)     bf16  BN-folded input weights (this direction)
    # bi_ref : (1, 3H)     f32   b_ih + b_hh[r,z] + BN shift term
    # whh_ref: (H, 3H)     bf16  fused hidden weights [Whr|Whz|Whn]
    # bhn_ref: (1, H)      f32   hidden bias of the n-gate (stays inside r*(.))
    # out_ref: (tc, B, H)  f32
    # h_ref  : (2, B, H)   f32   per-direction hidden state (persists across chunks)
    # gi_ref : (tc*B, 3H)  f32   chunk input projection (scratch)
    d = pl.program_id(0)
    c = pl.program_id(1)
    B = batch
    H = hidden
    tc = out_ref.shape[0]

    @pl.when(c == 0)
    def _init():
        h_ref[...] = jnp.zeros_like(h_ref)

    # Hoisted chunk-level input projection: one bf16 MXU GEMM per chunk with
    # fp32 accumulation.  gi rows are ordered (t, b) like the x rows.
    gi_ref[...] = (jnp.dot(x_ref[...], wi_ref[...],
                           preferred_element_type=jnp.float32) + bi_ref[...])

    whh = whh_ref[...]                                  # (H, 3H) bf16, resident
    bhn = jnp.broadcast_to(bhn_ref[...], (B, H))        # hoisted out of the loop

    def step(i, h):
        # forward dir (d==0): local time i; backward dir (d==1): tc-1-i
        idx = i + d * (tc - 1 - 2 * i)
        gi = gi_ref[pl.ds(idx * B, B), :]               # (B, 3H)
        gh = jnp.dot(h.astype(jnp.bfloat16), whh,
                     preferred_element_type=jnp.float32)   # (B, 3H) fp32 acc
        r = jax.nn.sigmoid(gi[:, :H] + gh[:, :H])
        z = jax.nn.sigmoid(gi[:, H:2 * H] + gh[:, H:2 * H])
        n = jnp.tanh(gi[:, 2 * H:] + r * (gh[:, 2 * H:] + bhn))
        h_new = (1.0 - z) * n + z * h                   # gate math stays fp32
        out_ref[idx] = h_new                            # (B, H) dynamic store
        return h_new

    h_ref[d] = lax.fori_loop(0, tc, step, h_ref[d], unroll=unroll)


def bigru_fused(x_tm2, w_i, b_i, w_h, b_hn, *, B, T, F, H):
    """x_tm2: (T*B, F) bf16 time-major rows; returns (2, T, B, H) fp32."""
    vmem_limit = _vmem_limit_bytes()

    # Per-grid-step VMEM (bytes): double-buffered x/out blocks and weights,
    # plus the gi scratch.  Solve for the largest time chunk that fits.
    fixed = (2 * F * 3 * H * 2          # W_i block   (bf16, double-buffered)
             + 2 * H * 3 * H * 2        # W_hh block  (bf16, double-buffered)
             + 2 * (3 * H + H) * 4      # biases      (f32,  double-buffered)
             + 2 * B * H * 4)           # hidden-state scratch (f32)
    per_t = B * (2 * 2 * F              # x rows      (bf16, double-buffered)
                 + 2 * 4 * H            # out rows    (f32,  double-buffered)
                 + 4 * 3 * H)           # gi scratch rows (f32)
    budget = (vmem_limit * 3) // 5
    tc_cap = max(1, min(1024, (budget - fixed) // max(per_t, 1)))
    tc = _pick_time_chunk(T, B, tc_cap)
    C = T // tc
    unroll = max(1, min(8, tc))         # cap unroll: full unroll of long chunks spills

    kernel = functools.partial(_bigru_fused_kernel, hidden=H, batch=B,
                               unroll=unroll)

    def chunk_map(d, c):
        # forward direction walks chunks 0..C-1, backward walks C-1..0
        return c + d * (C - 1 - 2 * c)

    return pl.pallas_call(
        kernel,
        grid=(2, C),
        in_specs=[
            pl.BlockSpec((tc * B, F), lambda d, c: (chunk_map(d, c), 0)),
            pl.BlockSpec((None, F, 3 * H), lambda d, c: (d, 0, 0)),
            pl.BlockSpec((None, 1, 3 * H), lambda d, c: (d, 0, 0)),
            pl.BlockSpec((None, H, 3 * H), lambda d, c: (d, 0, 0)),
            pl.BlockSpec((None, 1, H), lambda d, c: (d, 0, 0)),
        ],
        out_specs=pl.BlockSpec((None, tc, B, H),
                               lambda d, c: (d, chunk_map(d, c), 0, 0)),
        out_shape=jax.ShapeDtypeStruct((2, T, B, H), jnp.float32),
        scratch_shapes=[pltpu.VMEM((2, B, H), jnp.float32),
                        pltpu.VMEM((tc * B, 3 * H), jnp.float32)],
        compiler_params=pltpu.CompilerParams(
            # NOTE: the 'parallel' direction axis only buys ~2x on v7x (2 TCs);
            # on v5e/v6e the grid is a serial loop either way.
            dimension_semantics=("parallel", "arbitrary"),
            vmem_limit_bytes=vmem_limit),
    )(x_tm2, w_i, b_i, w_h, b_hn)


# ----------------------------------------------------------------------------
# Full module forward: BatchNorm1d -> bidirectional GRU
# ----------------------------------------------------------------------------
def gru_module_forward(x, params, *, eps=1e-5):
    B, T, F = x.shape
    H = params["w_hh_f"].shape[1]

    # -- pack torch-layout weights into fused kernel layouts (once per call) --
    def pack_dir(w_ih, w_hh, b_ih, b_hh):
        w_i = jnp.concatenate(
            [w_ih[0:H].T, w_ih[H:2 * H].T, w_ih[2 * H:3 * H].T], axis=1)  # (F,3H)
        w_h = jnp.concatenate(
            [w_hh[0:H].T, w_hh[H:2 * H].T, w_hh[2 * H:3 * H].T], axis=1)  # (H,3H)
        # r,z hidden biases are h-independent -> pre-add into the input bias
        b_i = jnp.concatenate([b_ih[0:H] + b_hh[0:H],
                               b_ih[H:2 * H] + b_hh[H:2 * H],
                               b_ih[2 * H:3 * H]]).reshape(1, 3 * H)
        b_hn = b_hh[2 * H:3 * H].reshape(1, H)           # stays inside r*(...)
        return w_i, w_h, b_i, b_hn

    wi_f, wh_f, bi_f, bhn_f = pack_dir(params["w_ih_f"], params["w_hh_f"],
                                       params["b_ih_f"], params["b_hh_f"])
    wi_b, wh_b, bi_b, bhn_b = pack_dir(params["w_ih_b"], params["w_hh_b"],
                                       params["b_ih_b"], params["b_hh_b"])
    w_i = jnp.stack([wi_f, wi_b])                        # (2, F, 3H) fp32
    w_h = jnp.stack([wh_f, wh_b])                        # (2, H, 3H) fp32
    b_i = jnp.stack([bi_f, bi_b])                        # (2, 1, 3H) fp32
    b_hn = jnp.stack([bhn_f, bhn_b])                     # (2, 1, H)  fp32

    # BatchNorm1d training-mode batch statistics -> per-feature scale/shift.
    # Uses the raw (B*T, F) row view: no transpose needed for the reduction.
    scale, shift = bn_scale_shift(x.reshape(B * T, F), params["bn_gamma"],
                                  params["bn_beta"], eps=eps)

    # Fold BN into the input projection (fp32), then cast MXU operands to bf16.
    w_i_eff = (w_i * scale.reshape(1, F, 1)).astype(jnp.bfloat16)
    b_i_eff = b_i + jnp.einsum("f,dfh->dh", shift[0], w_i)[:, None, :]

    # Time-major bf16 row view of x, rows ordered (t, b).  Single XLA layout
    # pass over the smallest tensor; bf16 also halves the kernel's x reads.
    x_tm2 = jnp.transpose(x, (1, 0, 2)).reshape(T * B, F).astype(jnp.bfloat16)

    out = bigru_fused(x_tm2, w_i_eff, b_i_eff, w_h.astype(jnp.bfloat16), b_hn,
                      B=B, T=T, F=F, H=H)                # (2, T, B, H) fp32

    # (2, T, B, H) -> (B, T, 2H): forward half first (torch bidirectional layout)
    # TODO(synk): for H % 128 == 0 this transpose can be removed by storing each
    # direction into its own 128-aligned lane half of a (B, T, 2H) output.
    return jnp.transpose(out, (2, 1, 0, 3)).reshape(B, T, 2 * H)


# ----------------------------------------------------------------------------
# Pure-JAX reference (torch fp32 semantics) for correctness check
# ----------------------------------------------------------------------------
def _ref_forward(x, params):
    mean = jnp.mean(x, axis=(0, 1), keepdims=True)
    var = jnp.mean((x - mean) ** 2, axis=(0, 1), keepdims=True)
    xn = (x - mean) * lax.rsqrt(var + 1e-5) * params["bn_gamma"] + params["bn_beta"]

    def run(x_seq, w_ih, w_hh, b_ih, b_hh):
        H = w_hh.shape[1]

        def cell(h, xt):
            gi = xt @ w_ih.T + b_ih
            gh = h @ w_hh.T + b_hh
            r = jax.nn.sigmoid(gi[:, :H] + gh[:, :H])
            z = jax.nn.sigmoid(gi[:, H:2 * H] + gh[:, H:2 * H])
            n = jnp.tanh(gi[:, 2 * H:] + r * gh[:, 2 * H:])
            h_new = (1 - z) * n + z * h
            return h_new, h_new

        _, ys = lax.scan(cell, jnp.zeros((x_seq.shape[1], H), jnp.float32), x_seq)
        return ys

    x_tm = jnp.transpose(xn, (1, 0, 2))
    of = run(x_tm, params["w_ih_f"], params["w_hh_f"],
             params["b_ih_f"], params["b_hh_f"])
    ob = run(x_tm[::-1], params["w_ih_b"], params["w_hh_b"],
             params["b_ih_b"], params["b_hh_b"])[::-1]
    return jnp.transpose(jnp.concatenate([of, ob], axis=-1), (1, 0, 2))


if __name__ == "__main__":
    B, T = 2, 8
    input_size, hidden_size = 32, 32

    key = jax.random.PRNGKey(0)
    keys = jax.random.split(key, 11)
    stdv = 1.0 / math.sqrt(hidden_size)

    def u(k, shape, lo=-stdv, hi=stdv):
        return jax.random.uniform(k, shape, jnp.float32, minval=lo, maxval=hi)

    params = {
        "bn_gamma": u(keys[9], (input_size,), 0.5, 1.5),
        "bn_beta": u(keys[10], (input_size,), -0.5, 0.5),
        "w_ih_f": u(keys[0], (3 * hidden_size, input_size)),
        "w_hh_f": u(keys[1], (3 * hidden_size, hidden_size)),
        "b_ih_f": u(keys[2], (3 * hidden_size,)),
        "b_hh_f": u(keys[3], (3 * hidden_size,)),
        "w_ih_b": u(keys[4], (3 * hidden_size, input_size)),
        "w_hh_b": u(keys[5], (3 * hidden_size, hidden_size)),
        "b_ih_b": u(keys[6], (3 * hidden_size,)),
        "b_hh_b": u(keys[7], (3 * hidden_size,)),
    }

    x = jax.random.normal(keys[8], (B, T, input_size), jnp.float32)

    out = jax.block_until_ready(gru_module_forward(x, params))
    assert out.shape == (B, T, 2 * hidden_size), out.shape

    ref = jax.block_until_ready(_ref_forward(x, params))
    max_err = float(jnp.max(jnp.abs(out - ref)))
    # bf16 MXU operands (fp32 accumulation) => looser tolerance than pure fp32.
    assert jnp.allclose(out, ref, atol=8e-2, rtol=8e-2), max_err

    print("KERNEL_OK")
</pallas_src>

<mosaic_0001>
module attributes {stable_mosaic.version = 11 : i64} {
  func.func @_bn_stats_kernel(%arg0: i32, %arg1: memref<16x32xf32, #tpu.memory_space<vmem>>, %arg2: memref<1x32xf32, #tpu.memory_space<vmem>>, %arg3: memref<1x32xf32, #tpu.memory_space<vmem>>, %arg4: memref<1x32xf32, #tpu.memory_space<vmem>>, %arg5: memref<1x32xf32, #tpu.memory_space<vmem>>, %arg6: memref<1x32xf32, #tpu.memory_space<vmem>>, %arg7: memref<1x32xf32, #tpu.memory_space<vmem>>) attributes {dimension_semantics = [#tpu.dimension_semantics<arbitrary>], iteration_bounds = array<i64: 1>, scalar_prefetch = 0 : i64, scratch_operands = 2 : i64, tpu.core_type = #tpu.core_type<tc>, window_params = [{transform_indices = @transform_0, window_bounds = array<i64: 16, 32>}, {pipeline_mode = #tpu.pipeline_mode<synchronous>, transform_indices = @transform_1, window_bounds = array<i64: 1, 32>}, {pipeline_mode = #tpu.pipeline_mode<synchronous>, transform_indices = @transform_2, window_bounds = array<i64: 1, 32>}, {pipeline_mode = #tpu.pipeline_mode<synchronous>, transform_indices = @transform_3, window_bounds = array<i64: 1, 32>}, {pipeline_mode = #tpu.pipeline_mode<synchronous>, transform_indices = @transform_4, window_bounds = array<i64: 1, 32>}]} {
    %c0_i32 = arith.constant 0 : i32
    %0 = arith.cmpi eq, %arg0, %c0_i32 : i32
    %1 = arith.extui %0 : i1 to i32
    %c0_i32_0 = arith.constant 0 : i32
    %2 = arith.cmpi ne, %1, %c0_i32_0 : i32
    scf.if %2 {
      %cst_13 = arith.constant 0.000000e+00 : f32
      %18 = vector.broadcast %cst_13 : f32 to vector<1x32xf32>
      %c0_14 = arith.constant 0 : index
      %c0_15 = arith.constant 0 : index
      %19 = vector.load %arg6[%c0_14, %c0_15] : memref<1x32xf32, #tpu.memory_space<vmem>>, vector<1x32xf32>
      tpu.vector_store %arg6[%c0_14, %c0_15], %18 {strides = array<i32>} : memref<1x32xf32, #tpu.memory_space<vmem>>, vector<1x32xf32>,
      %cst_16 = arith.constant 0.000000e+00 : f32
      %20 = vector.broadcast %cst_16 : f32 to vector<1x32xf32>
      %c0_17 = arith.constant 0 : index
      %c0_18 = arith.constant 0 : index
      %21 = vector.load %arg7[%c0_17, %c0_18] : memref<1x32xf32, #tpu.memory_space<vmem>>, vector<1x32xf32>
      tpu.vector_store %arg7[%c0_17, %c0_18], %20 {strides = array<i32>} : memref<1x32xf32, #tpu.memory_space<vmem>>, vector<1x32xf32>,
    } else {
    }
    %c0 = arith.constant 0 : index
    %c0_1 = arith.constant 0 : index
    %3 = vector.load %arg1[%c0, %c0_1] : memref<16x32xf32, #tpu.memory_space<vmem>>, vector<16x32xf32>
    %c0_2 = arith.constant 0 : index
    %c0_3 = arith.constant 0 : index
    %4 = vector.load %arg6[%c0_2, %c0_3] : memref<1x32xf32, #tpu.memory_space<vmem>>, vector<1x32xf32>
    %cst = arith.constant dense<0.000000e+00> : vector<32xf32>
    %5 = vector.multi_reduction <add>, %3, %cst [0] : vector<16x32xf32> to vector<32xf32>
    %6 = vector.shape_cast %5 : vector<32xf32> to vector<1x32xf32>
    %7 = arith.addf %4, %6 : vector<1x32xf32>
    %c0_4 = arith.constant 0 : index
    %c0_5 = arith.constant 0 : index
    %8 = vector.load %arg6[%c0_4, %c0_5] : memref<1x32xf32, #tpu.memory_space<vmem>>, vector<1x32xf32>
    tpu.vector_store %arg6[%c0_4, %c0_5], %7 {strides = array<i32>} : memref<1x32xf32, #tpu.memory_space<vmem>>, vector<1x32xf32>,
    %c0_6 = arith.constant 0 : index
    %c0_7 = arith.constant 0 : index
    %9 = vector.load %arg7[%c0_6, %c0_7] : memref<1x32xf32, #tpu.memory_space<vmem>>, vector<1x32xf32>
    %10 = arith.mulf %3, %3 : vector<16x32xf32>
    %cst_8 = arith.constant dense<0.000000e+00> : vector<32xf32>
    %11 = vector.multi_reduction <add>, %10, %cst_8 [0] : vector<16x32xf32> to vector<32xf32>
    %12 = vector.shape_cast %11 : vector<32xf32> to vector<1x32xf32>
    %13 = arith.addf %9, %12 : vector<1x32xf32>
    %c0_9 = arith.constant 0 : index
    %c0_10 = arith.constant 0 : index
    %14 = vector.load %arg7[%c0_9, %c0_10] : memref<1x32xf32, #tpu.memory_space<vmem>>, vector<1x32xf32>
    tpu.vector_store %arg7[%c0_9, %c0_10], %13 {strides = array<i32>} : memref<1x32xf32, #tpu.memory_space<vmem>>, vector<1x32xf32>,
    %c0_i32_11 = arith.constant 0 : i32
    %15 = arith.cmpi eq, %arg0, %c0_i32_11 : i32
    %16 = arith.extui %15 : i1 to i32
    %c0_i32_12 = arith.constant 0 : i32
    %17 = arith.cmpi ne, %16, %c0_i32_12 : i32
    scf.if %17 {
      %c0_13 = arith.constant 0 : index
      %c0_14 = arith.constant 0 : index
      %18 = vector.load %arg6[%c0_13, %c0_14] : memref<1x32xf32, #tpu.memory_space<vmem>>, vector<1x32xf32>
      %cst_15 = arith.constant 6.250000e-02 : f32
      %19 = vector.broadcast %cst_15 : f32 to vector<1x32xf32>
      %20 = arith.mulf %18, %19 : vector<1x32xf32>
      %c0_16 = arith.constant 0 : index
      %c0_17 = arith.constant 0 : index
      %21 = vector.load %arg7[%c0_16, %c0_17] : memref<1x32xf32, #tpu.memory_space<vmem>>, vector<1x32xf32>
      %cst_18 = arith.constant 6.250000e-02 : f32
      %22 = vector.broadcast %cst_18 : f32 to vector<1x32xf32>
      %23 = arith.mulf %21, %22 : vector<1x32xf32>
      %24 = arith.mulf %20, %20 : vector<1x32xf32>
      %25 = arith.subf %23, %24 : vector<1x32xf32>
      %cst_19 = arith.constant 0.000000e+00 : f32
      %26 = vector.broadcast %cst_19 : f32 to vector<1x32xf32>
      %27 = arith.maximumf %25, %26 : vector<1x32xf32>
      %cst_20 = arith.constant 9.99999974E-6 : f32
      %28 = vector.broadcast %cst_20 : f32 to vector<1x32xf32>
      %29 = arith.addf %27, %28 : vector<1x32xf32>
      %30 = math.rsqrt %29 : vector<1x32xf32>
      %c0_21 = arith.constant 0 : index
      %c0_22 = arith.constant 0 : index
      %31 = vector.load %arg2[%c0_21, %c0_22] : memref<1x32xf32, #tpu.memory_space<vmem>>, vector<1x32xf32>
      %32 = arith.mulf %31, %30 : vector<1x32xf32>
      %c0_23 = arith.constant 0 : index
      %c0_24 = arith.constant 0 : index
      %33 = vector.load %arg4[%c0_23, %c0_24] : memref<1x32xf32, #tpu.memory_space<vmem>>, vector<1x32xf32>
      tpu.vector_store %arg4[%c0_23, %c0_24], %32 {strides = array<i32>} : memref<1x32xf32, #tpu.memory_space<vmem>>, vector<1x32xf32>,
      %c0_25 = arith.constant 0 : index
      %c0_26 = arith.constant 0 : index
      %34 = vector.load %arg3[%c0_25, %c0_26] : memref<1x32xf32, #tpu.memory_space<vmem>>, vector<1x32xf32>
      %35 = arith.mulf %20, %32 : vector<1x32xf32>
      %36 = arith.subf %34, %35 : vector<1x32xf32>
      %c0_27 = arith.constant 0 : index
      %c0_28 = arith.constant 0 : index
      %37 = vector.load %arg5[%c0_27, %c0_28] : memref<1x32xf32, #tpu.memory_space<vmem>>, vector<1x32xf32>
      tpu.vector_store %arg5[%c0_27, %c0_28], %36 {strides = array<i32>} : memref<1x32xf32, #tpu.memory_space<vmem>>, vector<1x32xf32>,
    } else {
    }
    return
  }
  func.func @transform_0(%arg0: i32) -> (i32, i32) {
    %c0_i32 = arith.constant 0 : i32
    %c0_i32_0 = arith.constant 0 : i32
    return %arg0, %c0_i32 : i32, i32
  }
  func.func @transform_1(%arg0: i32) -> (i32, i32) {
    %c0_i32 = arith.constant 0 : i32
    %c0_i32_0 = arith.constant 0 : i32
    %c0_i32_1 = arith.constant 0 : i32
    return %c0_i32, %c0_i32_0 : i32, i32
  }
  func.func @transform_2(%arg0: i32) -> (i32, i32) {
    %c0_i32 = arith.constant 0 : i32
    %c0_i32_0 = arith.constant 0 : i32
    %c0_i32_1 = arith.constant 0 : i32
    return %c0_i32, %c0_i32_0 : i32, i32
  }
  func.func @transform_3(%arg0: i32) -> (i32, i32) {
    %c0_i32 = arith.constant 0 : i32
    %c0_i32_0 = arith.constant 0 : i32
    %c0_i32_1 = arith.constant 0 : i32
    return %c0_i32, %c0_i32_0 : i32, i32
  }
  func.func @transform_4(%arg0: i32) -> (i32, i32) {
    %c0_i32 = arith.constant 0 : i32
    %c0_i32_0 = arith.constant 0 : i32
    %c0_i32_1 = arith.constant 0 : i32
    return %c0_i32, %c0_i32_0 : i32, i32
  }
}

</mosaic_0001>

<bundles_post_ra>
// kernel: tpu_custom_call.1
= control target key start
LH: loop header
LB: loop body
LE: loop exit
PB: predicated region body
PF: predicated region fallthrough
CT: control target
= control target key end

     0   :  { %10 = vsyncpa [#allocation5], 0  ;;  %s375_s0 = inlined_call_operand.hbm [shape: f32[16,32], index: 0, kind: input, shape index: {}]   ;;  %s376_s1 = inlined_call_operand.hbm [shape: f32[1,32], index: 1, kind: input, shape index: {}]   ;;  %s377_s2 = inlined_call_operand.hbm [shape: f32[1,32], index: 2, kind: input, shape index: {}]   ;;  %s378_s3 = inlined_call_operand.hbm [shape: f32[1,32], index: 3, kind: output, shape index: {0}]   ;;  %s379_s4 = inlined_call_operand.hbm [shape: f32[1,32], index: 4, kind: output, shape index: {1}]  }
   0x1   :  { %11 = vsyncpa [#allocation8], 0 }
   0x2   :  { %12 = vsyncpa [#allocation6], 0 }
   0x3   :  { %13 = vsyncpa [#allocation12], 0  ;;  %s269_s15 = smov [#allocation7]   ;;  %s270_s17 = smov [#allocation4]  }
   0x4   :  { %s32_s16 = sshll.u32 %s269_s15, 4  ;;  %s19_s18 = sshll.u32 %s270_s17, 4  ;;  %s33_s16 = int_to_ptr.vmem [resolvable:$true] %s32_s16  ;;  %s302_s18 = int_to_ptr.vmem [resolvable:$true] %s19_s18 }
   0x5   :  { %s151_s21 = scalar_lea.hbm %s376_s1, 16 }
   0x6   :  { %p152_p0 = scmp.ne.s32.totalorder %s376_s1, %s151_s21  ;;  %p155_p1 = scmp.lt.u32.totalorder %s151_s21, %s376_s1 }
   0x8   :  { %p157_p2 = pnand %p155_p1, %p152_p0 }
   0xa   :  { %160 = shalt.err (!%p157_p2)
}
   0xb   :  { %s161_s26 = scalar_lea.vmem %s33_s16, 16  ;;  %s165_s27 = scalar_lea.vmem %s33_s16, 32 }
   0xc   :  { %p162_p3 = scmp.ne.s32.totalorder %s33_s16, %s161_s26  ;;  %p166_p4 = scmp.lt.s32.totalorder %s33_s16, %s33_s16 }
   0xd   :  { %p167_p5 = scmp.lt.s32.totalorder %s165_s27, %s161_s26 }
   0xf   :  { %p168_p6 = por %p167_p5, %p166_p4 }
  0x11   :  { %p169_p7 = pnand %p168_p6, %p162_p3 }
  0x13   :  { %172 = shalt.err (!%p169_p7)
}
  0x14   :  { %35 = dma.hbm_to_vmem [thread:$0]  %s376_s1, 16, %s33_s16, [#allocation8]  }
  0x15   :  { %s173_s6 = scalar_lea.hbm %s375_s0, 256 }
  0x16   :  { %p174_p8 = scmp.ne.s32.totalorder %s375_s0, %s173_s6  ;;  %p177_p9 = scmp.lt.u32.totalorder %s173_s6, %s375_s0 }
  0x18   :  { %p179_p10 = pnand %p177_p9, %p174_p8 }
  0x1a   :  { %182 = shalt.err (!%p179_p10)
}
  0x1b   :  { %s183_s11 = scalar_lea.vmem %s302_s18, 256  ;;  %p188_p12 = scmp.lt.s32.totalorder %s302_s18, %s302_s18 }
  0x1c   :  { %p184_p11 = scmp.ne.s32.totalorder %s302_s18, %s183_s11  ;;  %p189_p13 = scmp.lt.s32.totalorder %s183_s11, %s183_s11 }
  0x1e   :  { %p190_p0 = por %p189_p13, %p188_p12 }
  0x20   :  { %p191_p1 = pnand %p190_p0, %p184_p11 }
  0x22   :  { %194 = shalt.err (!%p191_p1)
}
  0x23   :  { %s271_s1 = smov 128   ;;  %s272_s12 = smov 8  }
  0x24   :  { %25 = dma.hbm_to_vmem [thread:$0]  %s375_s0, 256, %s302_s18, [#allocation5], %s271_s1, %s271_s1, %s272_s12  }
  0x25   :  { %s273_s15 = smov [#allocation9]   ;;  %s195_s20 = scalar_lea.hbm %s377_s2, 16 }
  0x26   :  { %s42_s16 = sshll.u32 %s273_s15, 4  ;;  %p196_p2 = scmp.ne.s32.totalorder %s377_s2, %s195_s20  ;;  %s43_s16 = int_to_ptr.vmem [resolvable:$true] %s42_s16 }
  0x27   :  { %p199_p3 = scmp.lt.u32.totalorder %s195_s20, %s377_s2 }
  0x29   :  { %p201_p4 = pnand %p199_p3, %p196_p2 }
  0x2b   :  { %204 = shalt.err (!%p201_p4)
}
  0x2c   :  { %s205_s25 = scalar_lea.vmem %s43_s16, 16  ;;  %s209_s0 = scalar_lea.vmem %s43_s16, 32 }
  0x2d   :  { %p206_p5 = scmp.ne.s32.totalorder %s43_s16, %s205_s25  ;;  %p210_p6 = scmp.lt.s32.totalorder %s43_s16, %s43_s16 }
  0x2e   :  { %p211_p7 = scmp.lt.s32.totalorder %s209_s0, %s205_s25 }
  0x30   :  { %p212_p8 = por %p211_p7, %p210_p6 }
  0x32   :  { %p213_p9 = pnand %p212_p8, %p206_p5 }
  0x34   :  { %216 = shalt.err (!%p213_p9)
}
  0x35   :  { %45 = dma.hbm_to_vmem [thread:$0]  %s377_s2, 16, %s43_s16, [#allocation8]  }
  0x36   :  { %261 = dma.done.wait [#allocation5], 256  }
  0x37   :  { %262 = vsyncadd [#allocation5], 4294967040 }
  0x38   :  { %263 = dma.done.wait [#allocation8], 32  }
  0x39   :  { %264 = vsyncadd [#allocation8], 4294967264  ;;  %vm59_vm0 = vcmask 253952   ;;  %v274_v0 = vmov 0.0   ;;  %vm65_vm1 = vcmask 261120   ;;  %v62_v1 = vld [vmem:[#allocation4] sm:$0xff] }
  0x3a   :  { %60 = vst.msk [vmem:[#allocation2] sm:$0x1] %vm59_vm0, %v274_v0  ;;  %61 = vst.msk [vmem:[#allocation3] sm:$0x1] %vm59_vm0, %v274_v0  ;;  %v63_v2 = vld [vmem:[#allocation4 + $0x8] sm:$0xff]  ;;  %v66_v3 = vsel %vm65_vm1, %v62_v1, 0.0  ;;  %v79_v5 = vmul.f32 %v62_v1, %v62_v1 }
  0x3b   :  { %v67_v4 = vsel %vm65_vm1, %v63_v2, 0.0  ;;  %v80_v6 = vmul.f32 %v63_v2, %v63_v2  ;;  %v104_v35 = vld [vmem:[#allocation7] sm:$0x1]  ;;  %s275_s2 = smov [#allocation10]   ;;  %v107_v38 = vld [vmem:[#allocation9] sm:$0x1] }
  0x3c   :  { %v68_v7 = vadd.f32 %v67_v4, %v66_v3  ;;  %v81_v8 = vsel %vm65_vm1, %v79_v5, 0.0  ;;  %s117_s27 = sshll.u32 %s275_s2, 4  ;;  %s276_s28 = smov [#allocation11]   ;;  %s118_s27 = int_to_ptr.vmem [resolvable:$true] %s117_s27 }
  0x3d   :  { %v82_v9 = vsel %vm65_vm1, %v80_v6, 0.0  ;;  %s127_s29 = sshll.u32 %s276_s28, 4  ;;  %s217_s30 = scalar_lea.vmem %s118_s27, 16  ;;  %s128_s29 = int_to_ptr.vmem [resolvable:$true] %s127_s29 }
  0x3e   :  { %v69_v10 = vrot.slane %v68_v7, 4  ;;  %v83_v11 = vadd.f32 %v82_v9, %v81_v8  ;;  %p218_p10 = scmp.ne.s32.totalorder %s118_s27, %s217_s30  ;;  %s221_s5 = scalar_lea.vmem %s118_s27, 32 }
  0x3f   :  { %p222_p11 = scmp.lt.s32.totalorder %s118_s27, %s118_s27  ;;  %p223_p12 = scmp.lt.s32.totalorder %s221_s5, %s217_s30 }
  0x40   :  { %v70_v12 = vadd.f32 %v69_v10, %v68_v7  ;;  %v84_v13 = vrot.slane %v83_v11, 4 }
  0x41   :  { %v64_v20 = vld [vmem:[#allocation2] sm:$0x1]  ;;  %v78_v23 = vld [vmem:[#allocation3] sm:$0x1]  ;;  %p224_p13 = por %p223_p12, %p222_p11 }
  0x42   :  { %v71_v14 = vrot.slane %v70_v12, 2  ;;  %v85_v15 = vadd.f32 %v84_v13, %v83_v11 }
  0x43   :  { %p225_p0 = pnand %p224_p13, %p218_p10 }
  0x44   :  { %v72_v16 = vadd.f32 %v71_v14, %v70_v12  ;;  %v86_v17 = vrot.slane %v85_v15, 2 }
  0x46   :  { %v73_v18 = vrot.slane %v72_v16, 1  ;;  %v87_v19 = vadd.f32 %v86_v17, %v85_v15 }
  0x48   :  { %v74_v21 = vadd.f32 %v73_v18, %v72_v16  ;;  %v88_v22 = vrot.slane %v87_v19, 1 }
  0x4a   :  { %v75_v24 = vadd.f32 %v74_v21, %v64_v20  ;;  %v89_v25 = vadd.f32 %v88_v22, %v87_v19 }
  0x4c   :  { %77 = vst.msk [vmem:[#allocation2] sm:$0x1] %vm59_vm0, %v75_v24  ;;  %v90_v26 = vadd.f32 %v89_v25, %v78_v23 }
  0x4e   :  { %91 = vst.msk [vmem:[#allocation3] sm:$0x1] %vm59_vm0, %v90_v26 }
  0x53   :  { %v95_v27 = vld [vmem:[#allocation2] sm:$0x1] }
  0x54   :  { %v96_v28 = vmul.f32 0.0625, %v95_v27 }
  0x55   :  { %v97_v29 = vld [vmem:[#allocation3] sm:$0x1] }
  0x56   :  { %v98_v30 = vmul.f32 0.0625, %v97_v29  ;;  %v99_v31 = vmul.f32 %v96_v28, %v96_v28 }
  0x58   :  { %v100_v32 = vsub.f32 %v98_v30, %v99_v31 }
  0x5a   :  { %v101_v33 = vmax.f32 %v100_v32, 0.0 }
  0x5c   :  { %v102_v34 = vadd.f32 1e-05, %v101_v33 }
  0x5e   :  { %149 = vrsqrt.f32 %v102_v34 }
  0x68   :  { %v150_v36 = vpop.eup %149 }
  0x69   :  { %v105_v37 = vmul.f32 %v150_v36, %v104_v35 }
  0x6b   :  { %106 = vst.msk [vmem:[#allocation10] sm:$0x1] %vm59_vm0, %v105_v37  ;;  %v108_v39 = vmul.f32 %v105_v37, %v96_v28 }
  0x6c   :  { %228 = shalt.err (!%p225_p0)
}
  0x6d   :  { %s229_s8 = scalar_lea.hbm %s378_s3, 16 }
  0x6e   :  { %p230_p1 = scmp.ne.s32.totalorder %s378_s3, %s229_s8  ;;  %p233_p2 = scmp.lt.u32.totalorder %s229_s8, %s378_s3 }
  0x70   :  { %p235_p3 = pnand %p233_p2, %p230_p1 }
  0x72   :  { %238 = shalt.err (!%p235_p3)
}
  0x73   :  { %120 = dma.vmem_to_hbm [thread:$0]  %s118_s27, 16, %s378_s3, [#allocation6]   ;;  %v109_v40 = vsub.f32 %v107_v38, %v108_v39 }
  0x74   :  { %s239_s14 = scalar_lea.vmem %s128_s29, 16  ;;  %s243_s15 = scalar_lea.vmem %s128_s29, 32 }
  0x75   :  { %110 = vst.msk [vmem:[#allocation11] sm:$0x1] %vm59_vm0, %v109_v40  ;;  %p240_p4 = scmp.ne.s32.totalorder %s128_s29, %s239_s14  ;;  %p244_p5 = scmp.lt.s32.totalorder %s128_s29, %s128_s29 }
  0x76   :  { %p245_p6 = scmp.lt.s32.totalorder %s243_s15, %s239_s14 }
  0x78   :  { %p246_p7 = por %p245_p6, %p244_p5 }
  0x7a   :  { %p247_p8 = pnand %p246_p7, %p240_p4 }
  0x7c   :  { %250 = shalt.err (!%p247_p8)
}
  0x7d   :  { %s251_s19 = scalar_lea.hbm %s379_s4, 16 }
  0x7e   :  { %p252_p9 = scmp.ne.s32.totalorder %s379_s4, %s251_s19  ;;  %p255_p10 = scmp.lt.u32.totalorder %s251_s19, %s379_s4 }
  0x80   :  { %p257_p11 = pnand %p255_p10, %p252_p9 }
  0x82   :  { %260 = shalt.err (!%p257_p11)
}
  0x83   :  { %130 = dma.vmem_to_hbm [thread:$0]  %s128_s29, 16, %s379_s4, [#allocation12]  }
  0x84   :  { %265 = dma.done.wait [#allocation6], 16  }
  0x85   :  { %266 = vsyncadd [#allocation6], 4294967280 }
  0x86   :  { %267 = dma.done.wait [#allocation12], 16  }
  0x87   :  { %268 = vsyncadd [#allocation12], 4294967280 }
  0x88   :  { %137 = vsyncpa [#allocation5], 1 }
  0x89   :  { %138 = vsyncpa [#allocation8], 1 }
  0x8a   :  { %139 = vsyncpa [#allocation6], 1 }
  0x8b   :  { %140 = vsyncpa [#allocation12], 1 }

</bundles_post_ra>
